<compile_context>
chip_gen: v5e
topology: v5e:2x2
jax: 0.10.0
libtpu: 0.0.40
codegen_flags: <defaults>
</compile_context>

<pallas_src>
import jax
import jax.numpy as jnp
import numpy as np
from jax.experimental import pallas as pl
from jax.experimental.pallas import tpu as pltpu


def _copy_kernel(x_ref, o_ref):
    # Pure materializing copy of one lane/sublane-dense block.
    o_ref[...] = x_ref[...]


def _num_tensorcores_per_chip():
    """Best-effort TensorCores-per-chip (2 on v7x, 1 on v5e/v6e)."""
    try:
        info = pltpu.get_tpu_info()
    except Exception:
        return 1
    for attr in ("num_tensorcores", "tensorcores_per_chip",
                 "num_cores_per_chip", "num_cores", "core_count"):
        v = getattr(info, attr, None)
        if isinstance(v, int) and v >= 1:
            return v
    return 1


def _divisors(n):
    out = set()
    i = 1
    while i * i <= n:
        if n % i == 0:
            out.add(i)
            out.add(n // i)
        i += 1
    return sorted(out)


def _choose_slab(total, itemsize, block_bytes, min_steps):
    """Pick (R, L, row_tile): copy the flat `total`-element buffer as
    (row_tile, L) blocks of an (R, L) slab.  L is a multiple of 128
    (lane-dense, unmasked vst), row_tile is a multiple of 8 (sublane-dense) or
    the full R, and each block stays under `block_bytes`.  Returns None if no
    such tiling exists (caller falls back to a single full-array block)."""
    if total % 128 != 0:
        return None
    cap = min(total, 8192)
    lane_cands = [l for l in range(128, cap + 1, 128) if total % l == 0]
    if not lane_cands:
        return None
    dense = [l for l in lane_cands if (total // l) % 8 == 0]
    L = max(dense) if dense else max(lane_cands)
    R = total // L
    budget_rows = max(1, block_bytes // (L * itemsize))
    # On multi-core chips, aim for at least `min_steps` grid steps so the
    # CORE_PARALLEL axis has work for every TensorCore.
    target_rows = max(8, R // min_steps) if min_steps > 1 else R
    max_rows = min(budget_rows, target_rows)
    good = [d for d in _divisors(R) if (d % 8 == 0 or d == R) and d <= max_rows]
    if not good:
        return None
    return R, L, max(good)


def flatten_forward(x, *, materialize=False, vmem_block_bytes=6 << 20,
                    vmem_limit_bytes=40 << 20):
    """Pallas equivalent of PyTorch Flatten (x.view(x.size(0), -1)).

    Default: metadata-only reshape (exactly the view semantics, no kernel).
    materialize=True: freshly materialized (N, F) buffer via a tiled,
    lane/sublane-dense HBM->VMEM->HBM Pallas copy.
    """
    N = int(x.shape[0])
    F = int(np.prod(x.shape[1:])) if x.ndim > 1 else 1

    # Contiguous (N, C, H, W) -> (N, F) is metadata-only: no HBM traffic.
    flat = jnp.reshape(x, (N, F))
    if not materialize:
        return flat

    itemsize = np.dtype(x.dtype).itemsize
    total = N * F
    hbm_bytes = 2 * total * itemsize  # one read + one write of the tensor
    cost = pl.CostEstimate(flops=0, transcendentals=0,
                           bytes_accessed=hbm_bytes)

    cores = _num_tensorcores_per_chip()
    min_steps = 4 * cores if cores > 1 else 1
    slab = _choose_slab(total, itemsize, vmem_block_bytes, min_steps)

    if slab is None:
        # TODO(synk): lane-unaligned element counts fall back to a single
        # full-array block copy; fine for small tensors, not tiled for huge.
        return pl.pallas_call(
            _copy_kernel,
            out_shape=jax.ShapeDtypeStruct((N, F), x.dtype),
            compiler_params=pltpu.CompilerParams(
                vmem_limit_bytes=max(vmem_limit_bytes,
                                     2 * hbm_bytes + (2 << 20))),
            cost_estimate=cost,
        )(flat)

    R, L, row_tile = slab
    grid_steps = R // row_tile
    # Slab view of the same flat buffer: still metadata-only.
    slab_in = jnp.reshape(flat, (R, L))

    # Only CORE_PARALLEL actually changes codegen for multi-TensorCore chips
    # (v7x); on single-core v5e/v6e keep "arbitrary" and the biggest blocks.
    if cores > 1 and grid_steps >= cores and grid_steps % cores == 0:
        semantics = (pltpu.CORE_PARALLEL,)
    else:
        semantics = ("arbitrary",)

    def _run(dim_semantics):
        return pl.pallas_call(
            _copy_kernel,
            out_shape=jax.ShapeDtypeStruct((R, L), x.dtype),
            grid_spec=pltpu.PrefetchScalarGridSpec(
                num_scalar_prefetch=0,
                grid=(grid_steps,),
                in_specs=[pl.BlockSpec((row_tile, L), lambda i: (i, 0))],
                out_specs=pl.BlockSpec((row_tile, L), lambda i: (i, 0)),
            ),
            compiler_params=pltpu.CompilerParams(
                dimension_semantics=dim_semantics,
                vmem_limit_bytes=vmem_limit_bytes),
            cost_estimate=cost,
        )(slab_in)

    try:
        out_slab = _run(semantics)
    except Exception:
        if semantics == ("arbitrary",):
            raise
        # Defensive fallback if CORE_PARALLEL is rejected on this chip.
        out_slab = _run(("arbitrary",))

    # (R, L) -> (N, F): metadata-only again.
    return jnp.reshape(out_slab, (N, F))


if __name__ == "__main__":
    # Small shapes consistent with the module: x (2, 4, 16, 16) NCHW.
    N, C, H, W = 2, 4, 16, 16
    key = jax.random.PRNGKey(0)
    x = jax.random.normal(key, (N, C, H, W), jnp.float32)

    # Default path: PyTorch view semantics (metadata-only, no kernel).
    view = jax.block_until_ready(flatten_forward(x))
    # Materializing Pallas copy path (exercises the kernel).
    out = jax.block_until_ready(flatten_forward(x, materialize=True))

    ref = np.asarray(x).reshape(N, -1)
    assert view.shape == (N, C * H * W)
    assert out.shape == (N, C * H * W)
    np.testing.assert_array_equal(np.asarray(view), ref)
    np.testing.assert_array_equal(np.asarray(out), ref)
    print("KERNEL_OK")
</pallas_src>

<mosaic_0001>
module attributes {stable_mosaic.version = 11 : i64} {
  func.func @_copy_kernel(%arg0: i32, %arg1: memref<8x256xf32, #tpu.memory_space<vmem>>, %arg2: memref<8x256xf32, #tpu.memory_space<vmem>>) attributes {dimension_semantics = [#tpu.dimension_semantics<arbitrary>], iteration_bounds = array<i64: 1>, scalar_prefetch = 0 : i64, scratch_operands = 0 : i64, tpu.core_type = #tpu.core_type<tc>, window_params = [{transform_indices = @transform_0, window_bounds = array<i64: 8, 256>}, {transform_indices = @transform_1, window_bounds = array<i64: 8, 256>}]} {
    %c0 = arith.constant 0 : index
    %c0_0 = arith.constant 0 : index
    %0 = vector.load %arg1[%c0, %c0_0] : memref<8x256xf32, #tpu.memory_space<vmem>>, vector<8x256xf32>
    %c0_1 = arith.constant 0 : index
    %c0_2 = arith.constant 0 : index
    %1 = vector.load %arg2[%c0_1, %c0_2] : memref<8x256xf32, #tpu.memory_space<vmem>>, vector<8x256xf32>
    tpu.vector_store %arg2[%c0_1, %c0_2], %0 {strides = array<i32>} : memref<8x256xf32, #tpu.memory_space<vmem>>, vector<8x256xf32>,
    return
  }
  func.func @transform_0(%arg0: i32) -> (i32, i32) {
    %c0_i32 = arith.constant 0 : i32
    %c0_i32_0 = arith.constant 0 : i32
    return %arg0, %c0_i32 : i32, i32
  }
  func.func @transform_1(%arg0: i32) -> (i32, i32) {
    %c0_i32 = arith.constant 0 : i32
    %c0_i32_0 = arith.constant 0 : i32
    return %arg0, %c0_i32 : i32, i32
  }
}

</mosaic_0001>

<bundles_post_ra>
// kernel: tpu_custom_call.1
= control target key start
LH: loop header
LB: loop body
LE: loop exit
PB: predicated region body
PF: predicated region fallthrough
CT: control target
= control target key end

     0   :  { %6 = vsyncpa [#allocation3], 0  ;;  %s116_s0 = inlined_call_operand.hbm [shape: f32[8,256], index: 0, kind: input, shape index: {}]   ;;  %s117_s1 = inlined_call_operand.hbm [shape: f32[8,256], index: 1, kind: output, shape index: {}]  }
   0x1   :  { %7 = vsyncpa [#allocation4], 0  ;;  %s13_s8 = sshll.u32 %s116_s0, 4  ;;  %s98_s9 = smov [#allocation2]   ;;  %s14_s8 = int_to_ptr.hbm [resolvable:$true] %s13_s8 }
   0x2   :  { %s15_s10 = sshll.u32 %s98_s9, 4  ;;  %s16_s10 = int_to_ptr.vmem [resolvable:$true] %s15_s10 }
   0x3   :  { %18 = dma.hbm_to_vmem [thread:$0]  %s14_s8, 256, %s16_s10, [#allocation3]  }
   0x4   :  { %94 = dma.done.wait [#allocation3], 256  }
   0x5   :  { %95 = vsyncadd [#allocation3], 4294967040  ;;  %s99_s11 = smov [#allocation5]   ;;  %s34_s15 = sshll.u32 %s117_s1, 4  ;;  %v23_v0 = vld [vmem:[#allocation2] sm:$0xff]  ;;  %v24_v1 = vld [vmem:[#allocation2 + $0x8] sm:$0xff]  ;;  %s35_s15 = int_to_ptr.hbm [resolvable:$true] %s34_s15 }
   0x6   :  { %s32_s12 = sshll.u32 %s99_s11, 4  ;;  %25 = vst [vmem:[#allocation5] sm:$0xff] %v23_v0  ;;  %s33_s12 = int_to_ptr.vmem [resolvable:$true] %s32_s12 }
   0x7   :  { %26 = vst [vmem:[#allocation5 + $0x8] sm:$0xff] %v24_v1 }
   0x8   :  { %37 = dma.vmem_to_hbm [thread:$0]  %s33_s12, 256, %s35_s15, [#allocation4]  }
   0x9   :  { %96 = dma.done.wait [#allocation4], 256  }
   0xa   :  { %97 = vsyncadd [#allocation4], 4294967040 }
   0xb   :  { %42 = vsyncpa [#allocation3], 1 }
   0xc   :  { %43 = vsyncpa [#allocation4], 1 }

</bundles_post_ra>
